<compile_context>
chip_gen: v6e
topology: v6e:2x2x1
jax: 0.10.0
libtpu: 0.0.40
codegen_flags: <defaults>
</compile_context>

<pallas_src>
import functools

import jax
import jax.numpy as jnp
from jax import lax
from jax.experimental import pallas as pl
from jax.experimental.pallas import tpu as pltpu


_DN = (((1,), (1,)), ((), ()))   # contract dim 1 of lhs with dim 1 of rhs


def _round_up(x, m):
    return ((x + m - 1) // m) * m


def _triplet_kernel(src_ref, tgt_full_ref, tgt_tile_ref, out_ref, *,
                    margin, loss_type, eps, n_rows, use_bf16_matmul):
    tm = src_ref.shape[0]
    n = tgt_full_ref.shape[0]

    src = src_ref[...].astype(jnp.float32)             # [TM, C]
    tgt = tgt_full_ref[...].astype(jnp.float32)        # [N,  C]
    tgt_tile = tgt_tile_ref[...].astype(jnp.float32)   # [TM, C] rows aligned w/ src

    # ---- squared pairwise distances for this row tile ----------------------
    # Cross term on the MXU, contracting the feature dim of both operands
    # directly (no transpose of tgt).
    if use_bf16_matmul:
        xy = lax.dot_general(src.astype(jnp.bfloat16), tgt.astype(jnp.bfloat16),
                             _DN, preferred_element_type=jnp.float32)   # [TM, N]
    else:
        xy = lax.dot_general(src, tgt, _DN,
                             preferred_element_type=jnp.float32)        # [TM, N]

    x2 = jnp.sum(src * src, axis=1, keepdims=True)                      # [TM, 1]
    # |tgt_j|^2 laid out along lanes as [1, N] via a tiny ones-row matmul
    # (avoids an XLU sublane->lane relayout of a column vector).
    ones_row = jnp.ones((1, tgt.shape[1]), jnp.float32)
    y2_row = lax.dot_general(ones_row, tgt * tgt, _DN,
                             preferred_element_type=jnp.float32)         # [1, N]

    d2 = x2 + y2_row - 2.0 * xy                                          # [TM, N]

    # ---- closest negative: min over off-diagonal squared distances ---------
    col = lax.broadcasted_iota(jnp.int32, (tm, n), 1)                    # [TM, N]
    row0 = pl.program_id(0) * tm
    row_idx = row0 + lax.broadcasted_iota(jnp.int32, (tm, 1), 0)         # [TM, 1]
    big = jnp.float32(3.0e38)
    cn2 = jnp.min(jnp.where(col == row_idx, big, d2), axis=1,
                  keepdims=True)                                         # [TM, 1]
    cn2 = jnp.maximum(cn2, jnp.float32(eps))

    # ---- furthest positive: elementwise ||src_i - tgt_i||^2 ----------------
    dpos = src - tgt_tile
    fp2 = jnp.maximum(jnp.sum(dpos * dpos, axis=1, keepdims=True),
                      jnp.float32(eps))                                  # [TM, 1]

    # sqrt only on the [TM, 1] results (monotone, eps clamp preserved).
    fp = jnp.sqrt(fp2)
    cn = jnp.sqrt(cn2)

    d = fp - cn
    if loss_type == 'hard':
        d = jnp.maximum(d + margin, 0.0)
    elif loss_type == 'soft':
        # stable softplus(x, beta=margin) = (max(x,0) + log1p(exp(-|x|))) / margin
        x = margin * d
        d = (jnp.maximum(x, 0.0) + jnp.log1p(jnp.exp(-jnp.abs(x)))) / margin
    elif loss_type == 'contrastive':
        d = fp + jnp.maximum(margin - cn, 0.0)
    # loss_type == 'none' -> raw fp - cn

    # accuracy: argmin_j dist[i,:] == i  <=>  fp2 <= cn2 (up to exact ties)
    correct = (fp2 <= cn2).astype(jnp.float32)                           # [TM, 1]

    # ---- per-row partials into one lane-dense output block -----------------
    valid = row_idx < n_rows                                             # [TM, 1]
    lane = lax.broadcasted_iota(jnp.int32, (tm, out_ref.shape[1]), 1)    # [TM, 128]
    out = jnp.where(valid & (lane == 0), d,
          jnp.where(valid & (lane == 1), fp,
          jnp.where(valid & (lane == 2), cn,
          jnp.where(valid & (lane == 3), correct, 0.0))))
    out_ref[...] = out


def triplet_batch_loss(src, tgt, *, margin=1.0, loss_type='hard', eps=1e-6,
                       tm=256, use_bf16_matmul=False):
    """Pallas implementation of TripletBatchLoss._forward_invariance.

    src, tgt: [N, C] float32 embeddings (batch rows -> sublanes, C -> lanes).
    Returns (loss_mean, accuracy, fp_mean, cn_mean) as float32 scalars.

    tm: row-tile size. Per-tile working set ~ tm*N*4 B; tm<=256 is safe for
        v7x (64 MiB VMEM) up to N~8192, tm=512 is fine on v5e/v6e (128 MiB).
    use_bf16_matmul: cast the MXU operands of the cross term to bfloat16
        (full-rate MXU on v6e/v7x, also valid on v5e); everything else is f32.
    """
    n, c = src.shape
    assert tgt.shape == (n, c)

    tm = max(8, min(int(tm), _round_up(n, 8)))
    tm = _round_up(tm, 8)
    num_tiles = pl.cdiv(n, tm)
    rows_out = num_tiles * tm
    lanes = 128

    kernel = functools.partial(
        _triplet_kernel, margin=float(margin), loss_type=loss_type,
        eps=float(eps), n_rows=n, use_bf16_matmul=bool(use_bf16_matmul))

    # Rough VMEM working-set estimate; only raise the scoped limit when needed.
    est = (2 * 2 * tm * c * 4        # src + row-aligned tgt tile, double-buffered
           + 2 * n * c * 4           # full-resident tgt
           + 2 * tm * lanes * 4      # output tiles
           + 4 * tm * n * 4)         # d2 / mask / iota temporaries headroom
    cp_kwargs = dict(dimension_semantics=("parallel",))
    if est > (32 << 20):
        cp_kwargs["vmem_limit_bytes"] = int(min(est + (4 << 20), 112 << 20))

    out = pl.pallas_call(
        kernel,
        out_shape=jax.ShapeDtypeStruct((rows_out, lanes), jnp.float32),
        grid_spec=pltpu.PrefetchScalarGridSpec(
            num_scalar_prefetch=0,
            grid=(num_tiles,),
            in_specs=[
                pl.BlockSpec((tm, c), lambda i: (i, 0)),   # src row tile
                pl.BlockSpec((n, c), lambda i: (0, 0)),    # tgt, full-resident
                pl.BlockSpec((tm, c), lambda i: (i, 0)),   # tgt rows aligned w/ src
            ],
            out_specs=pl.BlockSpec((tm, lanes), lambda i: (i, 0)),
        ),
        compiler_params=pltpu.CompilerParams(**cp_kwargs),
    )(src, tgt, tgt)

    sums = jnp.sum(out[:, :4], axis=0)   # [sum diff, sum fp, sum cn, n correct]
    inv_n = jnp.float32(1.0 / n)
    loss = sums[0] * inv_n
    fp_mean = sums[1] * inv_n
    cn_mean = sums[2] * inv_n
    acc = sums[3] * inv_n
    return loss, acc, fp_mean, cn_mean


def _reference(src, tgt, margin=1.0, eps=1e-6):
    # pure-JAX mirror of the PyTorch forward (loss_type='hard')
    n = src.shape[0]
    x2 = jnp.sum(src * src, axis=1, keepdims=True)
    y2 = jnp.sum(tgt * tgt, axis=1, keepdims=True)
    xy = jnp.einsum('ic,jc->ij', src, tgt, precision=lax.Precision.HIGHEST)
    dist = jnp.sqrt(jnp.maximum(x2 + y2.T - 2.0 * xy, eps))
    fp = jnp.diagonal(dist)
    off = jnp.where(jnp.eye(n, dtype=bool), jnp.inf, dist)
    cn = jnp.min(off, axis=1)
    diff = jax.nn.relu(fp - cn + margin)
    idx = jnp.argmin(dist, axis=1)
    acc = jnp.mean((idx == jnp.arange(n)).astype(jnp.float32))
    return diff.mean(), acc, fp.mean(), cn.mean()


def _check(got, want, rtol, atol):
    g, w = float(got), float(want)
    assert abs(g - w) <= atol + rtol * abs(w), (g, w)


# TODO(synk): the equivariance / attention branches and the anchor-based rotation-regression heads (MultiTaskDetectionLoss-style: quaternion mapping, so3_mean, sgtk anchors) need extra external inputs and are not kernelized here; only the default invariance triplet branch is.

if __name__ == "__main__":
    key = jax.random.PRNGKey(0)
    k1, k2 = jax.random.split(key)
    N, C = 16, 32                       # nb (batch), cdim (embedding dim)
    src = jax.random.normal(k1, (N, C), dtype=jnp.float32)
    # tgt = src + small noise, so matches are mostly correct (realistic setup)
    tgt = src + 0.05 * jax.random.normal(k2, (N, C), dtype=jnp.float32)

    # small tile to exercise the multi-tile "parallel" row grid
    outs = triplet_batch_loss(src, tgt, margin=1.0, loss_type='hard', tm=8)
    jax.block_until_ready(outs)
    ref = _reference(src, tgt, margin=1.0)
    for got, want in zip(outs, ref):
        _check(got, want, rtol=5e-4, atol=5e-4)

    # ragged row count (padded last tile) to exercise the row-validity mask
    outs2 = triplet_batch_loss(src[:12], tgt[:12], margin=1.0,
                               loss_type='hard', tm=8)
    jax.block_until_ready(outs2)
    ref2 = _reference(src[:12], tgt[:12], margin=1.0)
    for got, want in zip(outs2, ref2):
        _check(got, want, rtol=5e-4, atol=5e-4)

    # bf16 MXU-operand fast path (v6e/v7x); compared to the f32 reference
    outs_bf16 = triplet_batch_loss(src, tgt, margin=1.0, loss_type='hard',
                                   tm=8, use_bf16_matmul=True)
    jax.block_until_ready(outs_bf16)
    for got, want in zip(outs_bf16, ref):
        _check(got, want, rtol=2e-2, atol=2e-2)

    print("KERNEL_OK")
</pallas_src>

<mosaic_0001>
module attributes {stable_mosaic.version = 11 : i64} {
  func.func @_triplet_kernel(%arg0: i32, %arg1: memref<8x32xf32, #tpu.memory_space<vmem>>, %arg2: memref<16x32xf32, #tpu.memory_space<vmem>>, %arg3: memref<8x32xf32, #tpu.memory_space<vmem>>, %arg4: memref<8x128xf32, #tpu.memory_space<vmem>>) attributes {dimension_semantics = [#tpu.dimension_semantics<parallel>], iteration_bounds = array<i64: 2>, scalar_prefetch = 0 : i64, scratch_operands = 0 : i64, tpu.core_type = #tpu.core_type<tc>, window_params = [{transform_indices = @transform_0, window_bounds = array<i64: 8, 32>}, {pipeline_mode = #tpu.pipeline_mode<synchronous>, transform_indices = @transform_1, window_bounds = array<i64: 16, 32>}, {transform_indices = @transform_2, window_bounds = array<i64: 8, 32>}, {transform_indices = @transform_3, window_bounds = array<i64: 8, 128>}]} {
    %c0 = arith.constant 0 : index
    %c0_0 = arith.constant 0 : index
    %0 = vector.load %arg1[%c0, %c0_0] : memref<8x32xf32, #tpu.memory_space<vmem>>, vector<8x32xf32>
    %c0_1 = arith.constant 0 : index
    %c0_2 = arith.constant 0 : index
    %1 = vector.load %arg2[%c0_1, %c0_2] : memref<16x32xf32, #tpu.memory_space<vmem>>, vector<16x32xf32>
    %c0_3 = arith.constant 0 : index
    %c0_4 = arith.constant 0 : index
    %2 = vector.load %arg3[%c0_3, %c0_4] : memref<8x32xf32, #tpu.memory_space<vmem>>, vector<8x32xf32>
    %cst = arith.constant dense<0.000000e+00> : vector<8x16xf32>
    %3 = tpu.matmul %0, %1, %cst {dimension_numbers = #tpu.dot_dimension_numbers<[1], [1], [0], [0], [0, 0, 1, 0], [], []>} : vector<8x32xf32>, vector<16x32xf32>, vector<8x16xf32> -> vector<8x16xf32>
    %4 = arith.mulf %0, %0 : vector<8x32xf32>
    %cst_5 = arith.constant dense<0.000000e+00> : vector<8xf32>
    %5 = vector.multi_reduction <add>, %4, %cst_5 [1] : vector<8x32xf32> to vector<8xf32>
    %6 = vector.shape_cast %5 : vector<8xf32> to vector<8x1xf32>
    %cst_6 = arith.constant 1.000000e+00 : f32
    %7 = vector.broadcast %cst_6 : f32 to vector<1x32xf32>
    %8 = arith.mulf %1, %1 : vector<16x32xf32>
    %cst_7 = arith.constant dense<0.000000e+00> : vector<1x16xf32>
    %9 = tpu.matmul %7, %8, %cst_7 {dimension_numbers = #tpu.dot_dimension_numbers<[1], [1], [0], [0], [0, 0, 1, 0], [], []>} : vector<1x32xf32>, vector<16x32xf32>, vector<1x16xf32> -> vector<1x16xf32>
    %10 = vector.broadcast %6 : vector<8x1xf32> to vector<8x16xf32>
    %11 = vector.broadcast %9 : vector<1x16xf32> to vector<8x16xf32>
    %12 = arith.addf %10, %11 : vector<8x16xf32>
    %cst_8 = arith.constant 2.000000e+00 : f32
    %13 = vector.broadcast %cst_8 : f32 to vector<8x16xf32>
    %14 = arith.mulf %13, %3 : vector<8x16xf32>
    %15 = arith.subf %12, %14 : vector<8x16xf32>
    %16 = tpu.iota {dimensions = array<i32: 1>} : vector<8x16xi32>
    %c8_i32 = arith.constant 8 : i32
    %17 = arith.muli %arg0, %c8_i32 : i32
    %18 = tpu.iota {dimensions = array<i32: 0>} : vector<8x1xi32>
    %19 = vector.broadcast %17 : i32 to vector<8x1xi32>
    %20 = arith.addi %19, %18 : vector<8x1xi32>
    %21 = vector.broadcast %20 : vector<8x1xi32> to vector<8x16xi32>
    %22 = arith.cmpi eq, %16, %21 : vector<8x16xi32>
    %cst_9 = arith.constant 3.000000e+38 : f32
    %23 = vector.broadcast %cst_9 : f32 to vector<8x16xf32>
    %24 = arith.select %22, %23, %15 : vector<8x16xi1>, vector<8x16xf32>
    %cst_10 = arith.constant dense<0x7F800000> : vector<8xf32>
    %25 = vector.multi_reduction <minimumf>, %24, %cst_10 [1] : vector<8x16xf32> to vector<8xf32>
    %26 = vector.shape_cast %25 : vector<8xf32> to vector<8x1xf32>
    %cst_11 = arith.constant 9.99999997E-7 : f32
    %27 = vector.broadcast %cst_11 : f32 to vector<8x1xf32>
    %28 = arith.maximumf %26, %27 : vector<8x1xf32>
    %29 = arith.subf %0, %2 : vector<8x32xf32>
    %30 = arith.mulf %29, %29 : vector<8x32xf32>
    %cst_12 = arith.constant dense<0.000000e+00> : vector<8xf32>
    %31 = vector.multi_reduction <add>, %30, %cst_12 [1] : vector<8x32xf32> to vector<8xf32>
    %32 = vector.shape_cast %31 : vector<8xf32> to vector<8x1xf32>
    %cst_13 = arith.constant 9.99999997E-7 : f32
    %33 = vector.broadcast %cst_13 : f32 to vector<8x1xf32>
    %34 = arith.maximumf %32, %33 : vector<8x1xf32>
    %35 = math.sqrt %34 : vector<8x1xf32>
    %36 = math.sqrt %28 : vector<8x1xf32>
    %37 = arith.subf %35, %36 : vector<8x1xf32>
    %cst_14 = arith.constant 1.000000e+00 : f32
    %38 = vector.broadcast %cst_14 : f32 to vector<8x1xf32>
    %39 = arith.addf %37, %38 : vector<8x1xf32>
    %cst_15 = arith.constant 0.000000e+00 : f32
    %40 = vector.broadcast %cst_15 : f32 to vector<8x1xf32>
    %41 = arith.maximumf %39, %40 : vector<8x1xf32>
    %42 = arith.cmpf ole, %34, %28 : vector<8x1xf32>
    %43 = arith.extui %42 : vector<8x1xi1> to vector<8x1xi32>
    %44 = arith.sitofp %43 : vector<8x1xi32> to vector<8x1xf32>
    %c16_i32 = arith.constant 16 : i32
    %45 = vector.broadcast %c16_i32 : i32 to vector<8x1xi32>
    %46 = arith.cmpi slt, %20, %45 : vector<8x1xi32>
    %47 = tpu.iota {dimensions = array<i32: 1>} : vector<8x128xi32>
    %c0_i32 = arith.constant 0 : i32
    %48 = vector.broadcast %c0_i32 : i32 to vector<8x128xi32>
    %49 = arith.cmpi eq, %47, %48 : vector<8x128xi32>
    %50 = vector.broadcast %46 : vector<8x1xi1> to vector<8x128xi1>
    %51 = arith.andi %50, %49 : vector<8x128xi1>
    %c1_i32 = arith.constant 1 : i32
    %52 = vector.broadcast %c1_i32 : i32 to vector<8x128xi32>
    %53 = arith.cmpi eq, %47, %52 : vector<8x128xi32>
    %54 = vector.broadcast %46 : vector<8x1xi1> to vector<8x128xi1>
    %55 = arith.andi %54, %53 : vector<8x128xi1>
    %c2_i32 = arith.constant 2 : i32
    %56 = vector.broadcast %c2_i32 : i32 to vector<8x128xi32>
    %57 = arith.cmpi eq, %47, %56 : vector<8x128xi32>
    %58 = vector.broadcast %46 : vector<8x1xi1> to vector<8x128xi1>
    %59 = arith.andi %58, %57 : vector<8x128xi1>
    %c3_i32 = arith.constant 3 : i32
    %60 = vector.broadcast %c3_i32 : i32 to vector<8x128xi32>
    %61 = arith.cmpi eq, %47, %60 : vector<8x128xi32>
    %62 = vector.broadcast %46 : vector<8x1xi1> to vector<8x128xi1>
    %63 = arith.andi %62, %61 : vector<8x128xi1>
    %cst_16 = arith.constant 0.000000e+00 : f32
    %64 = vector.shape_cast %44 : vector<8x1xf32> to vector<8x1xf32>
    %65 = vector.broadcast %64 : vector<8x1xf32> to vector<8x128xf32>
    %66 = vector.broadcast %cst_16 : f32 to vector<8x128xf32>
    %67 = arith.select %63, %65, %66 : vector<8x128xi1>, vector<8x128xf32>
    %68 = vector.shape_cast %36 : vector<8x1xf32> to vector<8x1xf32>
    %69 = vector.broadcast %68 : vector<8x1xf32> to vector<8x128xf32>
    %70 = arith.select %59, %69, %67 : vector<8x128xi1>, vector<8x128xf32>
    %71 = vector.shape_cast %35 : vector<8x1xf32> to vector<8x1xf32>
    %72 = vector.broadcast %71 : vector<8x1xf32> to vector<8x128xf32>
    %73 = arith.select %55, %72, %70 : vector<8x128xi1>, vector<8x128xf32>
    %74 = vector.shape_cast %41 : vector<8x1xf32> to vector<8x1xf32>
    %75 = vector.broadcast %74 : vector<8x1xf32> to vector<8x128xf32>
    %76 = arith.select %51, %75, %73 : vector<8x128xi1>, vector<8x128xf32>
    %c0_17 = arith.constant 0 : index
    %c0_18 = arith.constant 0 : index
    %77 = vector.load %arg4[%c0_17, %c0_18] : memref<8x128xf32, #tpu.memory_space<vmem>>, vector<8x128xf32>
    tpu.vector_store %arg4[%c0_17, %c0_18], %76 {strides = array<i32>} : memref<8x128xf32, #tpu.memory_space<vmem>>, vector<8x128xf32>,
    return
  }
  func.func @transform_0(%arg0: i32) -> (i32, i32) {
    %c0_i32 = arith.constant 0 : i32
    %c0_i32_0 = arith.constant 0 : i32
    return %arg0, %c0_i32 : i32, i32
  }
  func.func @transform_1(%arg0: i32) -> (i32, i32) {
    %c0_i32 = arith.constant 0 : i32
    %c0_i32_0 = arith.constant 0 : i32
    %c0_i32_1 = arith.constant 0 : i32
    return %c0_i32, %c0_i32_0 : i32, i32
  }
  func.func @transform_2(%arg0: i32) -> (i32, i32) {
    %c0_i32 = arith.constant 0 : i32
    %c0_i32_0 = arith.constant 0 : i32
    return %arg0, %c0_i32 : i32, i32
  }
  func.func @transform_3(%arg0: i32) -> (i32, i32) {
    %c0_i32 = arith.constant 0 : i32
    %c0_i32_0 = arith.constant 0 : i32
    return %arg0, %c0_i32 : i32, i32
  }
}

</mosaic_0001>

<bundles_post_ra>
// kernel: tpu_custom_call.1
= control target key start
LH: loop header
LB: loop body
LE: loop exit
PB: predicated region body
PF: predicated region fallthrough
CT: control target
= control target key end

     0   :  { %8 = vsyncpa [#allocation3], 0  ;;  %s1124_s0 = inlined_call_operand.hbm [shape: f32[16,32], index: 0, kind: input, shape index: {}]   ;;  %s1125_s1 = inlined_call_operand.hbm [shape: f32[16,32], index: 1, kind: input, shape index: {}]   ;;  %s1126_s2 = inlined_call_operand.hbm [shape: f32[16,32], index: 2, kind: input, shape index: {}]   ;;  %s1127_s3 = inlined_call_operand.hbm [shape: f32[16,128], index: 3, kind: output, shape index: {}]  }
   0x1   :  { %10 = vsyncpa [#allocation3 + $0x1], 0 }
   0x2   :  { %11 = vsyncpa [#allocation6], 0 }
   0x3   :  { %12 = vsyncpa [#allocation4], 0 }
   0x4   :  { %14 = vsyncpa [#allocation4 + $0x1], 0  ;;  %s882_s12 = smov 0   ;;  %s884_s13 = smov 0  }
   0x5   :  { %s886_s14 = smov 0   ;;  %s888_s15 = smov 0  }
   0x6 LB: > { %s903_s16 = sadd.s32 1, %s851_s15   ;;  %s27_s17 = sadd.s32 1, %s847_s14  ;;  %s851_s15 = sphi %s888_s15, %s1152_s15   ;;  %s847_s14 = sphi %s886_s14, %s1151_s14   ;;  %s843_s13 = sphi %s884_s13, %s1150_s13   ;;  %s839_s12 = sphi %s882_s12, %s1149_s12  }
   0x7   : > { %s24_s18 = ssub.s32 %s851_s15, %s903_s16  ;;  %p1128_p0 = scmp.ne.s32.totalorder %s847_s14, %s843_s13 }
   0x8   : > { %p25_p1 = scmp.eq.s32.totalorder %s24_s18, 0  ;;  %p35_p2 = scmp.eq.s32.totalorder %s851_s15, 0 }
   0x9   : > { %p652_p4 = scmp.lt.s32.totalorder %s851_s15, 2  ;;  %s150_s20 = sand.u32 1, %s851_s15  }
   0xa   : > { %s914_s19 = scalar_select %p25_p1, %s847_s14, %s27_s17  }
   0xb   : > { %p36_p5 = por %p35_p2, %p1128_p0  ;;  %s152_s21 = sand.u32 1, %s847_s14  }
   0xc   : > { %s921_s22 = sshll.u32 %s152_s21, 3  ;;  %s586_s23 = sshll.u32 %s851_s15, 7 }
   0xd   : > { %s929_s26 = scalar_lea.hbm %s1124_s0, %s586_s23  ;;  %s154_s27 = scalar_lea.vmem [#allocation2], %s921_s22 }
   0xe   : > { %s161_s28 = sshll.u32 %s154_s27, 4  ;;  %p932_p6 = pnand %p652_p4, %p36_p5  ;;  %s162_s28 = int_to_ptr.vmem [resolvable:$true] %s161_s28 }
   0xf   : > { %s936_s30 = scalar_lea.sflag [#allocation3], %s150_s20  ;;  %s697_s4 = scalar_lea.hbm %s929_s26, 128 }
  0x10   : > { %p698_p7 = scmp.ne.s32.totalorder %s929_s26, %s697_s4  ;;  %p699_p8 = pneg %p932_p6 }
  0x11   : > { %s702_s7 = scalar_lea.hbm %s1124_s0, 256  ;;  %p703_p11 = scmp.lt.s32.totalorder %s929_s26, %s1124_s0 }
  0x12   : > { %p700_p9 = pnand %p699_p8, %p698_p7  ;;  %p704_p12 = scmp.lt.s32.totalorder %s702_s7, %s697_s4 }
  0x14   : > { %p701_p10 = pneg %p700_p9  ;;  %p705_p13 = por %p704_p12, %p703_p11 }
  0x16   : > { %p706_p1 = pnand %p705_p13, %p701_p10 }
  0x18   : > { %709 = shalt.err (!%p706_p1)
}
  0x19   : > { %s710_s10 = scalar_lea.vmem %s162_s28, 128  ;;  %s853_s11 = smov [#allocation2]  }
  0x1a   : > { %p711_p2 = scmp.ne.s32.totalorder %s162_s28, %s710_s10  ;;  %s715_s17 = sshll.u32 %s853_s11, 4  ;;  %s716_s17 = int_to_ptr.vmem [resolvable:$false] %s715_s17 }
  0x1b   : > { %s717_s18 = scalar_lea.vmem %s716_s17, 256  ;;  %p718_p7 = scmp.lt.s32.totalorder %s162_s28, %s716_s17 }
  0x1c   : > { %p713_p4 = pnand %p711_p2, %p699_p8  ;;  %p719_p9 = scmp.lt.s32.totalorder %s717_s18, %s710_s10 }
  0x1e   : > { %p714_p5 = pneg %p713_p4  ;;  %p720_p3 = por %p719_p9, %p718_p7 }
  0x20   : > { %p721_p0 = pnand %p720_p3, %p714_p5 }
  0x22   : > { %724 = shalt.err (!%p721_p0)
}
  0x23   : > { %643 = dma.hbm_to_vmem [thread:$0]  (!%p932_p6), %s929_s26, 128, %s162_s28, %s936_s30  }
  0x24   : > { %s960_s20 = sadd.s32 4294967295, %s851_s15   ;;  %s581_s21 = sadd.s32 4294967294, %s851_s15  }
  0x25   : > { %p40_p0 = scmp.ne.s32.totalorder %s843_s13, %s839_s12  ;;  %p1129_p3 = scmp.eq.s32.totalorder %s960_s20, 0 }
  0x26   : > { %p111_p10 = scmp.eq.s32.totalorder %s960_s20, 1  ;;  %p117_p11 = scmp.eq.s32.totalorder %s581_s21, 1 }
  0x27   : > { %p969_p12 = por %p1129_p3, %p40_p0  ;;  %p582_p13 = scmp.ge.s32.totalorder %s851_s15, 1 }
  0x28   : > { %p1136_p1 = scmp.ne.s32.totalorder %s847_s14, %s843_s13  ;;  %p981_p4 = por %p117_p11, %p40_p0 }
  0x29   : > { %s1135_s24 = scalar_select %p969_p12, 1, 0 }
  0x2a   : > { %p977_p2 = por %p111_p10, %p1136_p1  ;;  %p124_p5 = scmp.lt.s32.totalorder %s851_s15, 3 }
  0x2b   : > { %s1138_s26 = scalar_select %p981_p4, 1, 0 }
  0x2c   : > { %s1137_s25 = scalar_select %p977_p2, 1, 0 }
  0x2d   : > { %p986_p7 = pnand %p582_p13, %p124_p5  ;;  %s854_s28 = smov [#allocation5]  }
  0x2e   : > { %s136_s4 = sshll.u32 %s854_s28, 4  ;;  %s995_s7 = scalar_lea.hbm %s1126_s2, %s586_s23  ;;  %s1000_s4 = int_to_ptr.vmem [resolvable:$true] %s136_s4 }
  0x2f   : > { %s1139_s27 = scalar_select %p986_p7, 1, 0 }
  0x30   : > { %p636_p9 = pneg %p986_p7  ;;  %s172_s8 = scalar_lea.vmem [#allocation7], %s921_s22 }
  0x31   : > { %s179_s9 = sshll.u32 %s172_s8, 4  ;;  %s725_s11 = scalar_lea.hbm %s995_s7, 128  ;;  %s180_s9 = int_to_ptr.vmem [resolvable:$true] %s179_s9 }
  0x32   : > { %p1004_p0 = pnand %p636_p9, %p1129_p3  ;;  %p726_p10 = scmp.ne.s32.totalorder %s995_s7, %s725_s11 }
  0x33   : > { %s730_s18 = scalar_lea.hbm %s1126_s2, 256  ;;  %p731_p1 = scmp.lt.s32.totalorder %s995_s7, %s1126_s2 }
  0x34   : > { %s1140_s10 = scalar_select %p1004_p0, 1, 0 }
  0x35   : > { %p728_p11 = pnand %p726_p10, %p699_p8  ;;  %p732_p5 = scmp.lt.s32.totalorder %s730_s18, %s725_s11 }
  0x37   : > { %p729_p13 = pneg %p728_p11  ;;  %p733_p4 = por %p732_p5, %p731_p1 }
  0x39   : > { %p734_p9 = pnand %p733_p4, %p729_p13 }
  0x3b   : > { %737 = shalt.err (!%p734_p9)
}
  0x3c   : > { %s738_s28 = scalar_lea.vmem %s180_s9, 128  ;;  %s855_s5 = smov [#allocation7]  }
  0x3d   : > { %p739_p3 = scmp.ne.s32.totalorder %s180_s9, %s738_s28  ;;  %s743_s6 = sshll.u32 %s855_s5, 4  ;;  %s744_s6 = int_to_ptr.vmem [resolvable:$false] %s743_s6 }
  0x3e   : > { %s745_s8 = scalar_lea.vmem %s744_s6, 256  ;;  %p746_p11 = scmp.lt.s32.totalorder %s180_s9, %s744_s6 }
  0x3f   : > { %p741_p2 = pnand %p739_p3, %p699_p8  ;;  %p747_p12 = scmp.lt.s32.totalorder %s745_s8, %s738_s28 }
  0x41   : > { %p742_p10 = pneg %p741_p2  ;;  %p748_p7 = por %p747_p12, %p746_p11 }
  0x43   : > { %p749_p0 = pnand %p748_p7, %p742_p10 }
  0x45   : > { %752 = shalt.err (!%p749_p0)
}
  0x46   : > { %646 = dma.hbm_to_vmem [thread:$0]  (!%p932_p6), %s995_s7, 128, %s180_s9, %s936_s30  }
  0x47   : > { %p1141_p8 = scmp.ne.s32.totalorder %s1140_s10, 0  ;;  %s764_s11 = scalar_lea.vmem %s1000_s4, 256 }
  0x48   : > { %p765_p2 = scmp.ne.s32.totalorder %s1000_s4, %s764_s11  ;;  %p772_p1 = scmp.lt.s32.totalorder %s1000_s4, %s1000_s4 }
  0x49   : > { %p755_p3 = pneg %p1141_p8  ;;  %p773_p12 = scmp.lt.s32.totalorder %s764_s11, %s764_s11 }
  0x4b   : > { %p767_p4 = pnand %p765_p2, %p755_p3  ;;  %p774_p7 = por %p773_p12, %p772_p1 }
  0x4d   : > { %p768_p13 = pneg %p767_p4 }
  0x4f   : > { %p775_p0 = pnand %p774_p7, %p768_p13 }
  0x51   : > { %778 = shalt.err (!%p775_p0)
}
  0x52   : > { %s856_s29 = smov 128   ;;  %s857_s23 = smov 8  }
  0x53   : > { %639 = dma.hbm_to_vmem [thread:$0]  (!%p1141_p8), %s1125_s1, 256, %s1000_s4, [#allocation6], %s856_s29, %s856_s29, %s857_s23  }
  0x54   : > { %p1142_p6 = scmp.ne.s32.totalorder %s1139_s27, 0 }
  0x55   : > { %s190_s30 = sand.u32 (!%p1142_p6), 1, %s960_s20   ;;  %s192_s7 = sand.u32 (!%p1142_p6), 1, %s843_s13  }
  0x56   : > { %188 = sbr.rel (%p1142_p6) target bundleno = 487 (0x1e7), region = 32  ;;  %s1045_s9 = sshll.u32 (!%p1142_p6), %s192_s7, 3 }
  0x57   : > { %s191_s22 = scalar_lea.sflag (!%p1142_p6), [#allocation3], %s190_s30  ;;  %s194_s21 = scalar_lea.vmem (!%p1142_p6), [#allocation2], %s1045_s9 }
  0x58   : > { %p1143_p5 = scmp.ne.s32.totalorder (!%p1142_p6), %s1135_s24, 0 }
  0x5b   : > { %822 = dma.done.wait (%p1143_p5), %s191_s22, 128  }
  0x5c   : > { %824 = vsyncadd (%p1143_p5), %s191_s22, 4294967168  ;;  %p1144_p9 = scmp.eq.s32.totalorder %s960_s20, 0 }
  0x5e   : > { %826 = dma.done.wait (%p1144_p9), [#allocation6], 256   ;;  %p1145_p10 = pmov %p1144_p9 }
  0x5f   : > { %s207_s27 = scalar_lea.vmem [#allocation7], %s1045_s9 }
  0x60   : > { %828 = vsyncadd (%p1145_p10), [#allocation6], 4294967040 }
  0x61   : > { %830 = dma.done.wait (%p1143_p5), %s191_s22, 128  }
  0x62   : > { %832 = vsyncadd (%p1143_p5), %s191_s22, 4294967168  ;;  %v858_v0 = vmov 0.0   ;;  %vm859_vm0 = vmmov 0   ;;  %vm239_vm1 = vcmask 261120   ;;  %v237_v1 = vld [vmem:[#allocation5 + $0x8] sm:$0xff]  ;;  %v236_v2 = vld [vmem:[#allocation5] sm:$0xff]  ;;  %v404_v13 = vlaneseq }
  0x63   : > { %612 = vmatprep.subr.mxu0 %v858_v0  ;;  %619 = vmatprep.subr.mxu1 %v858_v0  ;;  %v235_v3 = vld [vmem:[%s194_s21] sm:$0xff]  ;;  %v324_v4 = vmul.f32 %v237_v1, %v237_v1  ;;  %v323_v8 = vmul.f32 %v236_v2, %v236_v2  ;;  %v860_v12 = vmov 1.0   ;;  %s600_s24 = sshll.u32 %s960_s20, 3  ;;  %vm420_vm3 = vcmask 130048   ;;  %s603_s4 = sshll.u32 %s960_s20, 7 }
  0x64   : > { %616 = vmatprep.mubr.msk.f32.mxu0 %vm859_vm0, %v858_v0  ;;  %623 = vmatprep.mubr.msk.f32.mxu1 %vm859_vm0, %v858_v0  ;;  %v319_v5 = vmul.f32 %v235_v3, %v235_v3  ;;  %v238_v6 = vld [vmem:[%s207_s27] sm:$0xff]  ;;  %v405_v14 = vshrl.u32 %v404_v13, 7  ;;  %v416_v16 = vstv %s600_s24  ;;  %v412_v20 = vand.u32 127, %v404_v13  ;;  %s234_s10 = scalar_lea.vmem [#allocation8], %s1045_s9  ;;  %s1086_s8 = scalar_lea.hbm %s1127_s3, %s603_s4 }
  0x65   : > { %613 = vmatpush3.xpose.msk.msra.mxu0 %vm239_vm1, %v237_v1  ;;  %v425_v7 = vsub.f32 %v235_v3, %v238_v6  ;;  %620 = vmatpush3.xpose.msk.msra.mxu1 %vm239_vm1, %v324_v4  ;;  %s481_s28 = sshll.u32 %s234_s10, 4  ;;  %s468_s11 = scalar_lea.sflag [#allocation4], %s192_s7  ;;  %s482_s28 = int_to_ptr.vmem [resolvable:$true] %s481_s28 }
  0x66   : > { %614 = vmatprep.subr.mxu0 %v858_v0  ;;  %v320_v9 = vsel %vm239_vm1, %v319_v5, 0.0  ;;  %621 = vmatprep.subr.mxu1 %v858_v0  ;;  %v406_v15 = vsub.s32 0, %v405_v14  ;;  %v417_v22 = vadd.s32 %v416_v16, %v405_v14  ;;  %vm460_vm6 = vcmp.eq.s32.totalorder %v412_v20, 3  ;;  %s779_s29 = scalar_lea.vmem %s482_s28, 128  ;;  %p1146_p8 = scmp.ne.s32.totalorder %s1137_s25, 0 }
  0x67   : > { %321 = vadd.xlane.f32.xlu0 %v320_v9  ;;  %v426_v10 = vmul.f32 %v425_v7, %v425_v7  ;;  %vm458_vm8 = vcmp.eq.s32.totalorder %v412_v20, 2  ;;  %vm456_vm13 = vcmp.eq.s32.totalorder %v412_v20, 1  ;;  %vm452_vm15 = vcmp.eq.s32.totalorder %v412_v20, 0  ;;  %p780_p11 = scmp.ne.s32.totalorder %s482_s28, %s779_s29  ;;  %s861_s20 = smov [#allocation8]  }
  0x68   : > { %vm418_vm2 = vcmp.eq.s32.totalorder %v412_v20, %v417_v22  ;;  %vm451_vm5 = vcmp.lt.s32.totalorder %v417_v22, 16  ;;  %s783_s23 = sshll.u32 %s861_s20, 4  ;;  %s784_s23 = int_to_ptr.vmem [resolvable:$false] %s783_s23 }
  0x69   : > { %615 = vmatpush3.xpose.msk.msra.mxu0 %vm239_vm1, %v236_v2  ;;  %v427_v11 = vsel %vm239_vm1, %v426_v10, 0.0  ;;  %622 = vmatpush3.xpose.msk.msra.mxu1 %vm239_vm1, %v323_v8  ;;  %vm461_vm11 = vmand %vm451_vm5, %vm460_vm6  ;;  %p781_p3 = pnand %p780_p11, %p1146_p8  ;;  %s785_s17 = scalar_lea.vmem %s784_s23, 256 }
  0x6a   : > { %428 = vadd.xlane.f32.xlu1 %v427_v11  ;;  %vm459_vm14 = vmand %vm451_vm5, %vm458_vm8  ;;  %p786_p4 = scmp.lt.s32.totalorder %s482_s28, %s784_s23  ;;  %p787_p13 = scmp.lt.s32.totalorder %s785_s17, %s779_s29 }
  0x6b   : > { %vm457_vm0 = vmand %vm451_vm5, %vm456_vm13  ;;  %p782_p2 = pneg %p781_p3 }
  0x6c   : > { %617 = vmatmul.mubr.msk.f32.vlgmr.msra.gmra.mxu0 %vm239_vm1, %v235_v3  ;;  %624 = vmatmul.mubr.msk.f32.vlgmr.msra.gmra.mxu1 %vm239_vm1, %v860_v12  ;;  %vm455_vm1 = vmand %vm451_vm5, %vm452_vm15  ;;  %p788_p1 = por %p787_p13, %p786_p4 }
  0x6e   : > { %p789_p12 = pnand %p788_p1, %p782_p2 }
  0xf0   : > { %v322_v18 = vpop.xlane.xlu0 %321 }
  0xf3   : > { %v429_v30 = vpop.xlane.xlu1 %428 }
  0xf4   : > { %v430_v31 = vmax.f32 %v429_v30, 1e-06 }
  0xf6   : > { %693 = vrsqrt.f32 %v430_v31  ;;  %vm433_vm4 = vcmp.eq.f32.partialorder %v430_v31, inf  ;;  %v436_v37 = vand.u32 2147483648, %v430_v31  ;;  %vm435_vm9 = vcmp.eq.f32.partialorder %v430_v31, 0.0 }
 0x103   : > { %v694_v34 = vpop.eup %693 }
 0x104   : > { %v432_v35 = vmul.f32 %v694_v34, %v430_v31 }
 0x106   : > { %v434_v38 = vsel %vm433_vm4, %v430_v31, %v432_v35 }
 0x107   : > { %v437_v43 = vsel %vm435_vm9, %v436_v37, %v434_v38 }
 0x12c   : > { %v315_v17 = vpop.f32.mrf.mxu0  ;;  %v400_v19 = vpop.f32.mrf.mxu1 }
 0x12d   : > { %v409_v23 = vmul.f32 2.0, %v315_v17  ;;  %v407_v24 = vrot.slane %v400_v19, %v406_v15 }
 0x12e   : > { %v618_v21 = vpop.f32.mrf.mxu0  ;;  %v625_v25 = vpop.f32.mrf.mxu1 }
 0x12f   : > { %v408_v26 = vadd.f32 %v407_v24, %v322_v18 }
 0x131   : > { %v410_v27 = vsub.f32 %v408_v26, %v409_v23 }
 0x133   : > { %v419_v28 = vsel %vm418_vm2, 3e+38, %v410_v27 }
 0x134   : > { %v421_v29 = vsel %vm420_vm3, %v419_v28, inf }
 0x135   : > { %422 = vmin.xlane.f32.xlu0 %v421_v29 }
 0x1be   : > { %v423_v32 = vpop.xlane.xlu0 %422 }
 0x1bf   : > { %v424_v33 = vmax.f32 %v423_v32, 1e-06 }
 0x1c1   : > { %695 = vrsqrt.f32 %v424_v33  ;;  %vm448_vm7 = vcmp.le.f32.partialorder %v430_v31, %v424_v33  ;;  %vm440_vm10 = vcmp.eq.f32.partialorder %v424_v33, inf  ;;  %v443_v40 = vand.u32 2147483648, %v424_v33 }
 0x1c2   : > { %vm442_vm12 = vcmp.eq.f32.partialorder %v424_v33, 0.0  ;;  %v601_v42 = vsel %vm448_vm7, 1.0, %v858_v0 }
 0x1c3   : > { %v462_v46 = vsel %vm461_vm11, %v601_v42, 0.0 }
 0x1ce   : > { %v696_v36 = vpop.eup %695 }
 0x1cf   : > { %v439_v39 = vmul.f32 %v696_v36, %v424_v33 }
 0x1d1   : > { %v441_v41 = vsel %vm440_vm10, %v424_v33, %v439_v39 }
 0x1d2   : > { %v444_v44 = vsel %vm442_vm12, %v443_v40, %v441_v41 }
 0x1d3   : > { %v445_v45 = vsub.f32 %v437_v43, %v444_v44  ;;  %v463_v48 = vsel %vm459_vm14, %v444_v44, %v462_v46 }
 0x1d4   : > { %v464_v50 = vsel %vm457_vm0, %v437_v43, %v463_v48 }
 0x1d5   : > { %v446_v47 = vadd.f32 1.0, %v445_v45 }
 0x1d7   : > { %v447_v49 = vmax.f32 %v446_v47, 0.0 }
 0x1d9   : > { %v465_v51 = vsel %vm455_vm1, %v447_v49, %v464_v50 }
 0x1da   : > { %466 = vst [vmem:[%s234_s10] sm:$0xff] %v465_v51 }
 0x1db   : > { %792 = shalt.err (!%p789_p12)
}
 0x1dc   : > { %s793_s18 = scalar_lea.hbm %s1086_s8, 128  ;;  %s797_s9 = scalar_lea.hbm %s1127_s3, 256 }
 0x1dd   : > { %p794_p7 = scmp.ne.s32.totalorder %s1086_s8, %s793_s18  ;;  %p798_p5 = scmp.lt.s32.totalorder %s1086_s8, %s1127_s3 }
 0x1de   : > { %p799_p9 = scmp.lt.s32.totalorder %s797_s9, %s793_s18 }
 0x1df   : > { %p795_p0 = pnand %p794_p7, %p1146_p8 }
 0x1e0   : > { %p800_p10 = por %p799_p9, %p798_p5 }
 0x1e1   : > { %p796_p6 = pneg %p795_p0 }
 0x1e3   : > { %p801_p11 = pnand %p800_p10, %p796_p6 }
 0x1e5   : > { %804 = shalt.err (!%p801_p11)
}
 0x1e6   : > { %634 = dma.vmem_to_hbm [thread:$0]  (%p1146_p8), %s482_s28, 128, %s1086_s8, %s468_s11  }
 0x1e7 PF: > { %s493_s27 = sand.u32 1, %s839_s12   ;;  %p1147_p3 = scmp.ne.s32.totalorder %s1138_s26, 0 }
 0x1e8   : > { %p1148_p2 = scmp.ge.s32.totalorder %s851_s15, 2  ;;  %s494_s24 = scalar_lea.sflag [#allocation4], %s493_s27 }
 0x1ea   : > { %p648_p4 = pnand %p1148_p2, %p1147_p3 }
 0x1ec   : > { %p649_p13 = pneg %p648_p4 }
 0x1ee   : > { %834 = dma.done.wait (%p649_p13), %s494_s24, 128  }
 0x1ef   : > { %836 = vsyncadd (%p649_p13), %s494_s24, 4294967168  ;;  %p17_p1 = scmp.ge.s32.totalorder %s903_s16, 4   ;;  %s1149_s12 = smov %s843_s13 }
 0x1f0   : > { %s1150_s13 = smov %s847_s14  ;;  %s1151_s14 = smov %s914_s19 }
 0x1f1   : > { %s1152_s15 = smov %s903_s16  ;;  %19 = sbr.rel (!%p17_p1) target bundleno = 6 (0x6), region = 92 }
 0x1f6   :  { %499 = vsyncpa [#allocation3], 1 }
 0x1f7   :  { %501 = vsyncpa [#allocation3 + $0x1], 1 }
 0x1f8   :  { %502 = vsyncpa [#allocation6], 1 }
 0x1f9   :  { %503 = vsyncpa [#allocation4], 1 }
 0x1fa   :  { %505 = vsyncpa [#allocation4 + $0x1], 1 }

</bundles_post_ra>
